<compile_context>
chip_gen: v7x
topology: tpu7x:2x2x1
jax: 0.10.0
libtpu: 0.0.40
codegen_flags: <defaults>
</compile_context>

<pallas_src>
import math
import jax
import jax.numpy as jnp
from jax.experimental import pallas as pl
from jax.experimental.pallas import tpu as pltpu


def _round_up(x, m):
    return (x + m - 1) // m * m


def q_p_forward(X, V, rms_w, W1, b1, heads, decoders, *,
                tb=256, tk=1024, xproc_dtype=jnp.bfloat16):
    """Fused Q_P forward.

    heads:    list of (Wh (H, k), bh (1, k))   -- per-k encoder heads
    decoders: list of P_k (k, F)               -- bias-free decoders
    Returns ((recon_list, probs_list), X_preprocessed).
    """
    B, D = X.shape
    F = int(V.shape[1])
    H = int(W1.shape[1])
    ks = [int(Wh.shape[1]) for Wh, _ in heads]
    n_heads = len(ks)
    sum_k = sum(ks)
    offs = [sum(ks[:i]) for i in range(n_heads)]

    f32 = jnp.float32
    # Padded / tiled sizes: lane-dense last dims, MXU-friendly batch tile.
    Fp = _round_up(F, 128)
    Hp = _round_up(H, 128)
    Kp = _round_up(sum_k, 128)
    tb = max(16, min(tb, _round_up(B, 16)))   # multiple of 16 (bf16 sublane pack)
    Bp = _round_up(B, tb)
    tk = min(tk, _round_up(D, 128))
    Dp = _round_up(D, tk)

    # Zero-pad all operands once on the host side. Padding rows/cols are inert:
    # zero V rows contribute nothing to X@V, zero F/H/K columns stay zero
    # through RMSNorm / ReLU, and the softmax is segmented over real lanes only.
    Xp = jnp.zeros((Bp, Dp), X.dtype).at[:B, :D].set(X)
    Vp = jnp.zeros((Dp, Fp), f32).at[:D, :F].set(V.astype(f32))
    rms_wp = jnp.zeros((1, Fp), f32).at[:, :F].set(rms_w.astype(f32))
    W1p = jnp.zeros((Fp, Hp), f32).at[:F, :H].set(W1.astype(f32))
    b1p = jnp.zeros((1, Hp), f32).at[:, :H].set(b1.astype(f32))

    Whc = jnp.zeros((Hp, Kp), f32)
    bhc = jnp.zeros((1, Kp), f32)
    Pst = jnp.zeros((Kp, n_heads * Fp), f32)
    for h, ((Wh, bh), Pd) in enumerate(zip(heads, decoders)):
        o, k = offs[h], ks[h]
        Whc = Whc.at[:H, o:o + k].set(Wh.astype(f32))
        bhc = bhc.at[:, o:o + k].set(bh.astype(f32))
        Pst = Pst.at[o:o + k, h * Fp:h * Fp + F].set(Pd.astype(f32))

    inv_F = 1.0 / float(F)

    def kernel(x_ref, v_ref, rmsw_ref, w1_ref, b1_ref, whc_ref, bhc_ref,
               pst_ref, xproc_ref, probs_ref, recon_ref, acc_ref):
        j = pl.program_id(1)

        @pl.when(j == 0)
        def _():
            acc_ref[...] = jnp.zeros_like(acc_ref)

        # Preprocess: X/2 ; genotype 3 -> 1.5 after /2 -> masked to 0.
        x = x_ref[...].astype(jnp.float32) * 0.5
        x = jnp.where(x == 1.5, 0.0, x)
        xproc_ref[...] = x.astype(xproc_ref.dtype)   # {0,0.5,1} exact in bf16
        # PCA projection accumulated over marker chunks.
        acc_ref[...] += jnp.dot(x, v_ref[...], preferred_element_type=jnp.float32)

        @pl.when(j == pl.num_programs(1) - 1)
        def _():
            xp = acc_ref[...]
            # RMSNorm over the F real features (padded cols are exactly zero).
            ms = jnp.sum(xp * xp, axis=-1, keepdims=True) * inv_F
            xn = xp * jax.lax.rsqrt(ms + 1e-8) * rmsw_ref[...]
            enc = jnp.maximum(
                jnp.dot(xn, w1_ref[...], preferred_element_type=jnp.float32)
                + b1_ref[...], 0.0)
            # All heads' logits in one MXU pass.
            logits = (jnp.dot(enc, whc_ref[...],
                              preferred_element_type=jnp.float32)
                      + bhc_ref[...])
            # Segmented softmax (one static lane-mask per head; masks disjoint).
            col = jax.lax.broadcasted_iota(jnp.int32, logits.shape, 1)
            probs = jnp.zeros_like(logits)
            for o, k in zip(offs, ks):
                mask = (col >= o) & (col < o + k)
                m = jnp.max(jnp.where(mask, logits, -jnp.inf),
                            axis=-1, keepdims=True)
                e = jnp.where(mask, jnp.exp(logits - m), 0.0)
                probs = probs + e / jnp.sum(e, axis=-1, keepdims=True)
            probs_ref[...] = probs
            # All decoders in one MXU pass: Pst column-block h is non-zero only
            # in head h's row segment, so each Fp block equals probs_h @ P_h.
            rec = jnp.dot(probs, pst_ref[...], preferred_element_type=jnp.float32)
            recon_ref[...] = jnp.clip(rec, 0.0, 1.0)

    # VMEM budget estimate (double-buffered tiles + resident weights + scratch).
    est = 0
    est += 2 * tb * tk * jnp.dtype(X.dtype).itemsize            # X tiles
    est += 2 * tk * Fp * 4                                      # V tiles
    est += 2 * (Fp * Hp + Fp + Hp + Hp * Kp + Kp + Kp * n_heads * Fp) * 4
    est += 2 * tb * tk * jnp.dtype(xproc_dtype).itemsize        # xproc tiles
    est += 2 * tb * Kp * 4 + 2 * tb * n_heads * Fp * 4          # probs / recon
    est += tb * Fp * 4                                          # accumulator
    vmem_limit = int(min(max(int(est * 1.5), 32 * 1024 * 1024),
                         64 * 1024 * 1024))

    grid = (Bp // tb, Dp // tk)
    xproc_p, probs_p, recon_p = pl.pallas_call(
        kernel,
        out_shape=(jax.ShapeDtypeStruct((Bp, Dp), xproc_dtype),
                   jax.ShapeDtypeStruct((Bp, Kp), f32),
                   jax.ShapeDtypeStruct((Bp, n_heads * Fp), f32)),
        grid=grid,
        in_specs=[
            pl.BlockSpec((tb, tk), lambda i, j: (i, j)),            # X tile
            pl.BlockSpec((tk, Fp), lambda i, j: (j, 0)),            # V tile
            pl.BlockSpec((1, Fp), lambda i, j: (0, 0)),             # RMS weight
            pl.BlockSpec((Fp, Hp), lambda i, j: (0, 0)),            # W1
            pl.BlockSpec((1, Hp), lambda i, j: (0, 0)),             # b1
            pl.BlockSpec((Hp, Kp), lambda i, j: (0, 0)),            # Wh concat
            pl.BlockSpec((1, Kp), lambda i, j: (0, 0)),             # bh concat
            pl.BlockSpec((Kp, n_heads * Fp), lambda i, j: (0, 0)),  # P stacked
        ],
        out_specs=(
            pl.BlockSpec((tb, tk), lambda i, j: (i, j)),            # xproc
            pl.BlockSpec((tb, Kp), lambda i, j: (i, 0)),            # probs slab
            pl.BlockSpec((tb, n_heads * Fp), lambda i, j: (i, 0)),  # recon slab
        ),
        scratch_shapes=[pltpu.VMEM((tb, Fp), jnp.float32)],
        compiler_params=pltpu.CompilerParams(
            dimension_semantics=("parallel", "arbitrary"),
            vmem_limit_bytes=vmem_limit),
    )(Xp, Vp, rms_wp, W1p, b1p, Whc, bhc, Pst)

    xproc = xproc_p[:B, :D]
    probs_list = [probs_p[:B, o:o + k] for o, k in zip(offs, ks)]
    recon_list = [recon_p[:B, h * Fp:h * Fp + F] for h in range(n_heads)]
    return (recon_list, probs_list), xproc


def _reference(X, V, rms_w, W1, b1, heads, decoders):
    """Pure-JAX reference mirroring the PyTorch module."""
    x = X.astype(jnp.float32) / 2
    x = jnp.where(x == 1.5, 0.0, x)
    xp = x @ V
    xn = xp * jax.lax.rsqrt(jnp.mean(xp * xp, -1, keepdims=True) + 1e-8) * rms_w
    enc = jnp.maximum(xn @ W1 + b1, 0.0)
    probs_list, recon_list = [], []
    for (Wh, bh), Pdec in zip(heads, decoders):
        logits = enc @ Wh + bh
        p = jax.nn.softmax(logits, axis=1)
        probs_list.append(p)
        recon_list.append(jnp.clip(p @ Pdec, 0.0, 1.0))
    return (recon_list, probs_list), x


def _make_inputs(key, B, D, F, H, ks_list):
    k_x, k_v, k_w1, k_b1, k_h, k_p = jax.random.split(key, 6)
    # genotype-like input in {0,1,2,3}; 3 == missing
    X = jax.random.randint(k_x, (B, D), 0, 4).astype(jnp.float32)
    V = jax.random.normal(k_v, (D, F), jnp.float32) * 0.1
    rms_w = jnp.ones((1, F), jnp.float32)
    W1 = jax.random.normal(k_w1, (F, H), jnp.float32) * 0.1
    b1 = jax.random.normal(k_b1, (1, H), jnp.float32) * 0.01
    heads, decoders = [], []
    hk = jax.random.split(k_h, len(ks_list))
    pk = jax.random.split(k_p, len(ks_list))
    for i, k in enumerate(ks_list):
        kw, kb = jax.random.split(hk[i])
        heads.append((jax.random.normal(kw, (H, k), jnp.float32) * 0.1,
                      jax.random.normal(kb, (1, k), jnp.float32) * 0.01))
        decoders.append(jax.random.uniform(pk[i], (k, F), jnp.float32))
    return X, V, rms_w, W1, b1, heads, decoders


def _check(args, **kw):
    (recons, probs), x_proc = q_p_forward(*args, **kw)
    jax.block_until_ready((recons, probs, x_proc))
    (recons_r, probs_r), x_proc_r = _reference(*args)
    assert jnp.allclose(x_proc.astype(jnp.float32), x_proc_r, atol=1e-5, rtol=1e-5)
    for a, b in zip(probs, probs_r):
        assert jnp.allclose(a, b, atol=1e-5, rtol=1e-5)
    for a, b in zip(recons, recons_r):
        assert jnp.allclose(a, b, atol=1e-5, rtol=1e-5)


if __name__ == "__main__":
    key = jax.random.PRNGKey(0)
    k1, k2 = jax.random.split(key)

    # Small aligned case: batch=16, markers=64, num_features=32, hidden=32.
    _check(_make_inputs(k1, 16, 64, 32, 32, [3, 4]))

    # Unaligned case exercising batch padding and multi-step D accumulation.
    _check(_make_inputs(k2, 24, 300, 20, 40, [3, 4, 5]), tb=16, tk=128)

    print("KERNEL_OK")
</pallas_src>

<mosaic_0001>
module attributes {stable_mosaic.version = 11 : i64} {
  func.func @kernel(%arg0: i32, %arg1: i32, %arg2: memref<16x128xf32, #tpu.memory_space<vmem>>, %arg3: memref<128x128xf32, #tpu.memory_space<vmem>>, %arg4: memref<1x128xf32, #tpu.memory_space<vmem>>, %arg5: memref<128x128xf32, #tpu.memory_space<vmem>>, %arg6: memref<1x128xf32, #tpu.memory_space<vmem>>, %arg7: memref<128x128xf32, #tpu.memory_space<vmem>>, %arg8: memref<1x128xf32, #tpu.memory_space<vmem>>, %arg9: memref<128x256xf32, #tpu.memory_space<vmem>>, %arg10: memref<16x128xbf16, #tpu.memory_space<vmem>>, %arg11: memref<16x128xf32, #tpu.memory_space<vmem>>, %arg12: memref<16x256xf32, #tpu.memory_space<vmem>>, %arg13: memref<16x128xf32, #tpu.memory_space<vmem>>) attributes {dimension_semantics = [#tpu.dimension_semantics<parallel>, #tpu.dimension_semantics<arbitrary>], iteration_bounds = array<i64: 1, 1>, scalar_prefetch = 0 : i64, scratch_operands = 1 : i64, tpu.core_type = #tpu.core_type<tc>, window_params = [{transform_indices = @transform_0, window_bounds = array<i64: 16, 128>}, {transform_indices = @transform_1, window_bounds = array<i64: 128, 128>}, {pipeline_mode = #tpu.pipeline_mode<synchronous>, transform_indices = @transform_2, window_bounds = array<i64: 1, 128>}, {pipeline_mode = #tpu.pipeline_mode<synchronous>, transform_indices = @transform_3, window_bounds = array<i64: 128, 128>}, {pipeline_mode = #tpu.pipeline_mode<synchronous>, transform_indices = @transform_4, window_bounds = array<i64: 1, 128>}, {pipeline_mode = #tpu.pipeline_mode<synchronous>, transform_indices = @transform_5, window_bounds = array<i64: 128, 128>}, {pipeline_mode = #tpu.pipeline_mode<synchronous>, transform_indices = @transform_6, window_bounds = array<i64: 1, 128>}, {pipeline_mode = #tpu.pipeline_mode<synchronous>, transform_indices = @transform_7, window_bounds = array<i64: 128, 256>}, {transform_indices = @transform_8, window_bounds = array<i64: 16, 128>}, {transform_indices = @transform_9, window_bounds = array<i64: 16, 128>}, {transform_indices = @transform_10, window_bounds = array<i64: 16, 256>}]} {
    %c0_i32 = arith.constant 0 : i32
    %0 = arith.cmpi eq, %arg1, %c0_i32 : i32
    %1 = arith.extui %0 : i1 to i32
    %c0_i32_0 = arith.constant 0 : i32
    %2 = arith.cmpi ne, %1, %c0_i32_0 : i32
    scf.if %2 {
      %cst_15 = arith.constant 0.000000e+00 : f32
      %20 = vector.broadcast %cst_15 : f32 to vector<16x128xf32>
      %c0_16 = arith.constant 0 : index
      %c0_17 = arith.constant 0 : index
      %21 = vector.load %arg13[%c0_16, %c0_17] : memref<16x128xf32, #tpu.memory_space<vmem>>, vector<16x128xf32>
      tpu.vector_store %arg13[%c0_16, %c0_17], %20 {strides = array<i32>} : memref<16x128xf32, #tpu.memory_space<vmem>>, vector<16x128xf32>,
    } else {
    }
    %c0 = arith.constant 0 : index
    %c0_1 = arith.constant 0 : index
    %3 = vector.load %arg2[%c0, %c0_1] : memref<16x128xf32, #tpu.memory_space<vmem>>, vector<16x128xf32>
    %cst = arith.constant 5.000000e-01 : f32
    %4 = vector.broadcast %cst : f32 to vector<16x128xf32>
    %5 = arith.mulf %3, %4 : vector<16x128xf32>
    %cst_2 = arith.constant 1.500000e+00 : f32
    %6 = vector.broadcast %cst_2 : f32 to vector<16x128xf32>
    %7 = arith.cmpf oeq, %5, %6 : vector<16x128xf32>
    %cst_3 = arith.constant 0.000000e+00 : f32
    %8 = vector.broadcast %cst_3 : f32 to vector<16x128xf32>
    %9 = arith.select %7, %8, %5 : vector<16x128xi1>, vector<16x128xf32>
    %10 = arith.truncf %9 : vector<16x128xf32> to vector<16x128xbf16>
    %c0_4 = arith.constant 0 : index
    %c0_5 = arith.constant 0 : index
    %11 = vector.load %arg10[%c0_4, %c0_5] : memref<16x128xbf16, #tpu.memory_space<vmem>>, vector<16x128xbf16>
    tpu.vector_store %arg10[%c0_4, %c0_5], %10 {strides = array<i32>} : memref<16x128xbf16, #tpu.memory_space<vmem>>, vector<16x128xbf16>,
    %c0_6 = arith.constant 0 : index
    %c0_7 = arith.constant 0 : index
    %12 = vector.load %arg13[%c0_6, %c0_7] : memref<16x128xf32, #tpu.memory_space<vmem>>, vector<16x128xf32>
    %c0_8 = arith.constant 0 : index
    %c0_9 = arith.constant 0 : index
    %13 = vector.load %arg3[%c0_8, %c0_9] : memref<128x128xf32, #tpu.memory_space<vmem>>, vector<128x128xf32>
    %cst_10 = arith.constant dense<0.000000e+00> : vector<16x128xf32>
    %14 = tpu.matmul %9, %13, %cst_10 {dimension_numbers = #tpu.dot_dimension_numbers<[1], [0], [0], [1], [0, 0, 1, 1], [], []>} : vector<16x128xf32>, vector<128x128xf32>, vector<16x128xf32> -> vector<16x128xf32>
    %15 = arith.addf %12, %14 : vector<16x128xf32>
    %c0_11 = arith.constant 0 : index
    %c0_12 = arith.constant 0 : index
    %16 = vector.load %arg13[%c0_11, %c0_12] : memref<16x128xf32, #tpu.memory_space<vmem>>, vector<16x128xf32>
    tpu.vector_store %arg13[%c0_11, %c0_12], %15 {strides = array<i32>} : memref<16x128xf32, #tpu.memory_space<vmem>>, vector<16x128xf32>,
    %c0_i32_13 = arith.constant 0 : i32
    %17 = arith.cmpi eq, %arg1, %c0_i32_13 : i32
    %18 = arith.extui %17 : i1 to i32
    %c0_i32_14 = arith.constant 0 : i32
    %19 = arith.cmpi ne, %18, %c0_i32_14 : i32
    scf.if %19 {
      %c0_15 = arith.constant 0 : index
      %c0_16 = arith.constant 0 : index
      %20 = vector.load %arg13[%c0_15, %c0_16] : memref<16x128xf32, #tpu.memory_space<vmem>>, vector<16x128xf32>
      %21 = arith.mulf %20, %20 : vector<16x128xf32>
      %cst_17 = arith.constant dense<0.000000e+00> : vector<16xf32>
      %22 = vector.multi_reduction <add>, %21, %cst_17 [1] : vector<16x128xf32> to vector<16xf32>
      %23 = vector.shape_cast %22 : vector<16xf32> to vector<16x1xf32>
      %cst_18 = arith.constant 3.125000e-02 : f32
      %24 = vector.broadcast %cst_18 : f32 to vector<16x1xf32>
      %25 = arith.mulf %23, %24 : vector<16x1xf32>
      %cst_19 = arith.constant 9.99999993E-9 : f32
      %26 = vector.broadcast %cst_19 : f32 to vector<16x1xf32>
      %27 = arith.addf %25, %26 : vector<16x1xf32>
      %28 = math.rsqrt %27 : vector<16x1xf32>
      %29 = vector.broadcast %28 : vector<16x1xf32> to vector<16x128xf32>
      %30 = arith.mulf %20, %29 : vector<16x128xf32>
      %c0_20 = arith.constant 0 : index
      %c0_21 = arith.constant 0 : index
      %31 = vector.load %arg4[%c0_20, %c0_21] : memref<1x128xf32, #tpu.memory_space<vmem>>, vector<1x128xf32>
      %32 = vector.broadcast %31 : vector<1x128xf32> to vector<16x128xf32>
      %33 = arith.mulf %30, %32 : vector<16x128xf32>
      %c0_22 = arith.constant 0 : index
      %c0_23 = arith.constant 0 : index
      %34 = vector.load %arg5[%c0_22, %c0_23] : memref<128x128xf32, #tpu.memory_space<vmem>>, vector<128x128xf32>
      %cst_24 = arith.constant dense<0.000000e+00> : vector<16x128xf32>
      %35 = tpu.matmul %33, %34, %cst_24 {dimension_numbers = #tpu.dot_dimension_numbers<[1], [0], [0], [1], [0, 0, 1, 1], [], []>} : vector<16x128xf32>, vector<128x128xf32>, vector<16x128xf32> -> vector<16x128xf32>
      %c0_25 = arith.constant 0 : index
      %c0_26 = arith.constant 0 : index
      %36 = vector.load %arg6[%c0_25, %c0_26] : memref<1x128xf32, #tpu.memory_space<vmem>>, vector<1x128xf32>
      %37 = vector.broadcast %36 : vector<1x128xf32> to vector<16x128xf32>
      %38 = arith.addf %35, %37 : vector<16x128xf32>
      %cst_27 = arith.constant 0.000000e+00 : f32
      %39 = vector.broadcast %cst_27 : f32 to vector<16x128xf32>
      %40 = arith.maximumf %38, %39 : vector<16x128xf32>
      %c0_28 = arith.constant 0 : index
      %c0_29 = arith.constant 0 : index
      %41 = vector.load %arg7[%c0_28, %c0_29] : memref<128x128xf32, #tpu.memory_space<vmem>>, vector<128x128xf32>
      %cst_30 = arith.constant dense<0.000000e+00> : vector<16x128xf32>
      %42 = tpu.matmul %40, %41, %cst_30 {dimension_numbers = #tpu.dot_dimension_numbers<[1], [0], [0], [1], [0, 0, 1, 1], [], []>} : vector<16x128xf32>, vector<128x128xf32>, vector<16x128xf32> -> vector<16x128xf32>
      %c0_31 = arith.constant 0 : index
      %c0_32 = arith.constant 0 : index
      %43 = vector.load %arg8[%c0_31, %c0_32] : memref<1x128xf32, #tpu.memory_space<vmem>>, vector<1x128xf32>
      %44 = vector.broadcast %43 : vector<1x128xf32> to vector<16x128xf32>
      %45 = arith.addf %42, %44 : vector<16x128xf32>
      %46 = tpu.iota {dimensions = array<i32: 1>} : vector<16x128xi32>
      %cst_33 = arith.constant 0.000000e+00 : f32
      %47 = vector.broadcast %cst_33 : f32 to vector<16x128xf32>
      %c0_i32_34 = arith.constant 0 : i32
      %48 = vector.broadcast %c0_i32_34 : i32 to vector<16x128xi32>
      %49 = arith.cmpi sge, %46, %48 : vector<16x128xi32>
      %c3_i32 = arith.constant 3 : i32
      %50 = vector.broadcast %c3_i32 : i32 to vector<16x128xi32>
      %51 = arith.cmpi slt, %46, %50 : vector<16x128xi32>
      %52 = arith.andi %49, %51 : vector<16x128xi1>
      %cst_35 = arith.constant 0xFF800000 : f32
      %53 = vector.broadcast %cst_35 : f32 to vector<16x128xf32>
      %54 = arith.select %52, %45, %53 : vector<16x128xi1>, vector<16x128xf32>
      %cst_36 = arith.constant dense<0xFF800000> : vector<16xf32>
      %55 = vector.multi_reduction <maximumf>, %54, %cst_36 [1] : vector<16x128xf32> to vector<16xf32>
      %56 = vector.shape_cast %55 : vector<16xf32> to vector<16x1xf32>
      %57 = vector.broadcast %56 : vector<16x1xf32> to vector<16x128xf32>
      %58 = arith.subf %45, %57 : vector<16x128xf32>
      %59 = math.exp %58 : vector<16x128xf32>
      %cst_37 = arith.constant 0.000000e+00 : f32
      %60 = vector.broadcast %cst_37 : f32 to vector<16x128xf32>
      %61 = arith.select %52, %59, %60 : vector<16x128xi1>, vector<16x128xf32>
      %cst_38 = arith.constant dense<0.000000e+00> : vector<16xf32>
      %62 = vector.multi_reduction <add>, %61, %cst_38 [1] : vector<16x128xf32> to vector<16xf32>
      %63 = vector.shape_cast %62 : vector<16xf32> to vector<16x1xf32>
      %64 = vector.broadcast %63 : vector<16x1xf32> to vector<16x128xf32>
      %65 = arith.divf %61, %64 : vector<16x128xf32>
      %66 = arith.addf %47, %65 : vector<16x128xf32>
      %c3_i32_39 = arith.constant 3 : i32
      %67 = vector.broadcast %c3_i32_39 : i32 to vector<16x128xi32>
      %68 = arith.cmpi sge, %46, %67 : vector<16x128xi32>
      %c7_i32 = arith.constant 7 : i32
      %69 = vector.broadcast %c7_i32 : i32 to vector<16x128xi32>
      %70 = arith.cmpi slt, %46, %69 : vector<16x128xi32>
      %71 = arith.andi %68, %70 : vector<16x128xi1>
      %cst_40 = arith.constant 0xFF800000 : f32
      %72 = vector.broadcast %cst_40 : f32 to vector<16x128xf32>
      %73 = arith.select %71, %45, %72 : vector<16x128xi1>, vector<16x128xf32>
      %cst_41 = arith.constant dense<0xFF800000> : vector<16xf32>
      %74 = vector.multi_reduction <maximumf>, %73, %cst_41 [1] : vector<16x128xf32> to vector<16xf32>
      %75 = vector.shape_cast %74 : vector<16xf32> to vector<16x1xf32>
      %76 = vector.broadcast %75 : vector<16x1xf32> to vector<16x128xf32>
      %77 = arith.subf %45, %76 : vector<16x128xf32>
      %78 = math.exp %77 : vector<16x128xf32>
      %cst_42 = arith.constant 0.000000e+00 : f32
      %79 = vector.broadcast %cst_42 : f32 to vector<16x128xf32>
      %80 = arith.select %71, %78, %79 : vector<16x128xi1>, vector<16x128xf32>
      %cst_43 = arith.constant dense<0.000000e+00> : vector<16xf32>
      %81 = vector.multi_reduction <add>, %80, %cst_43 [1] : vector<16x128xf32> to vector<16xf32>
      %82 = vector.shape_cast %81 : vector<16xf32> to vector<16x1xf32>
      %83 = vector.broadcast %82 : vector<16x1xf32> to vector<16x128xf32>
      %84 = arith.divf %80, %83 : vector<16x128xf32>
      %85 = arith.addf %66, %84 : vector<16x128xf32>
      %c0_44 = arith.constant 0 : index
      %c0_45 = arith.constant 0 : index
      %86 = vector.load %arg11[%c0_44, %c0_45] : memref<16x128xf32, #tpu.memory_space<vmem>>, vector<16x128xf32>
      tpu.vector_store %arg11[%c0_44, %c0_45], %85 {strides = array<i32>} : memref<16x128xf32, #tpu.memory_space<vmem>>, vector<16x128xf32>,
      %c0_46 = arith.constant 0 : index
      %c0_47 = arith.constant 0 : index
      %87 = vector.load %arg9[%c0_46, %c0_47] : memref<128x256xf32, #tpu.memory_space<vmem>>, vector<128x256xf32>
      %cst_48 = arith.constant dense<0.000000e+00> : vector<16x256xf32>
      %88 = tpu.matmul %85, %87, %cst_48 {dimension_numbers = #tpu.dot_dimension_numbers<[1], [0], [0], [1], [0, 0, 1, 1], [], []>} : vector<16x128xf32>, vector<128x256xf32>, vector<16x256xf32> -> vector<16x256xf32>
      %cst_49 = arith.constant 0.000000e+00 : f32
      %cst_50 = arith.constant 1.000000e+00 : f32
      %89 = vector.broadcast %cst_49 : f32 to vector<16x256xf32>
      %90 = arith.maximumf %89, %88 : vector<16x256xf32>
      %91 = vector.broadcast %cst_50 : f32 to vector<16x256xf32>
      %92 = arith.minimumf %91, %90 : vector<16x256xf32>
      %c0_51 = arith.constant 0 : index
      %c0_52 = arith.constant 0 : index
      %93 = vector.load %arg12[%c0_51, %c0_52] : memref<16x256xf32, #tpu.memory_space<vmem>>, vector<16x256xf32>
      tpu.vector_store %arg12[%c0_51, %c0_52], %92 {strides = array<i32>} : memref<16x256xf32, #tpu.memory_space<vmem>>, vector<16x256xf32>,
    } else {
    }
    return
  }
  func.func @transform_0(%arg0: i32, %arg1: i32) -> (i32, i32) {
    %c0_i32 = arith.constant 0 : i32
    return %arg0, %arg1 : i32, i32
  }
  func.func @transform_1(%arg0: i32, %arg1: i32) -> (i32, i32) {
    %c0_i32 = arith.constant 0 : i32
    %c0_i32_0 = arith.constant 0 : i32
    return %arg1, %c0_i32 : i32, i32
  }
  func.func @transform_2(%arg0: i32, %arg1: i32) -> (i32, i32) {
    %c0_i32 = arith.constant 0 : i32
    %c0_i32_0 = arith.constant 0 : i32
    %c0_i32_1 = arith.constant 0 : i32
    return %c0_i32, %c0_i32_0 : i32, i32
  }
  func.func @transform_3(%arg0: i32, %arg1: i32) -> (i32, i32) {
    %c0_i32 = arith.constant 0 : i32
    %c0_i32_0 = arith.constant 0 : i32
    %c0_i32_1 = arith.constant 0 : i32
    return %c0_i32, %c0_i32_0 : i32, i32
  }
  func.func @transform_4(%arg0: i32, %arg1: i32) -> (i32, i32) {
    %c0_i32 = arith.constant 0 : i32
    %c0_i32_0 = arith.constant 0 : i32
    %c0_i32_1 = arith.constant 0 : i32
    return %c0_i32, %c0_i32_0 : i32, i32
  }
  func.func @transform_5(%arg0: i32, %arg1: i32) -> (i32, i32) {
    %c0_i32 = arith.constant 0 : i32
    %c0_i32_0 = arith.constant 0 : i32
    %c0_i32_1 = arith.constant 0 : i32
    return %c0_i32, %c0_i32_0 : i32, i32
  }
  func.func @transform_6(%arg0: i32, %arg1: i32) -> (i32, i32) {
    %c0_i32 = arith.constant 0 : i32
    %c0_i32_0 = arith.constant 0 : i32
    %c0_i32_1 = arith.constant 0 : i32
    return %c0_i32, %c0_i32_0 : i32, i32
  }
  func.func @transform_7(%arg0: i32, %arg1: i32) -> (i32, i32) {
    %c0_i32 = arith.constant 0 : i32
    %c0_i32_0 = arith.constant 0 : i32
    %c0_i32_1 = arith.constant 0 : i32
    return %c0_i32, %c0_i32_0 : i32, i32
  }
  func.func @transform_8(%arg0: i32, %arg1: i32) -> (i32, i32) {
    %c0_i32 = arith.constant 0 : i32
    return %arg0, %arg1 : i32, i32
  }
  func.func @transform_9(%arg0: i32, %arg1: i32) -> (i32, i32) {
    %c0_i32 = arith.constant 0 : i32
    %c0_i32_0 = arith.constant 0 : i32
    return %arg0, %c0_i32 : i32, i32
  }
  func.func @transform_10(%arg0: i32, %arg1: i32) -> (i32, i32) {
    %c0_i32 = arith.constant 0 : i32
    %c0_i32_0 = arith.constant 0 : i32
    return %arg0, %c0_i32 : i32, i32
  }
}

</mosaic_0001>

<bundles_post_ra>
// kernel: tpu_custom_call.1
= control target key start
LH: loop header
LB: loop body
LE: loop exit
PB: predicated region body
PF: predicated region fallthrough
CT: control target
= control target key end

     0   :  { %16 = vsyncpa [#allocation4], 0  ;;  %s1449_s0 = inlined_call_operand.hbm [shape: f32[16,128], index: 0, kind: input, shape index: {}]   ;;  %s1450_s1 = inlined_call_operand.hbm [shape: f32[128,128], index: 1, kind: input, shape index: {}]   ;;  %s1451_s2 = inlined_call_operand.vmem [shape: f32[1,128], index: 2, kind: input, shape index: {}]   ;;  %s1452_s3 = inlined_call_operand.hbm [shape: f32[128,128], index: 3, kind: input, shape index: {}]   ;;  %s1453_s4 = inlined_call_operand.vmem [shape: f32[1,128], index: 4, kind: input, shape index: {}]   ;;  %s1454_s5 = inlined_call_operand.hbm [shape: f32[128,128], index: 5, kind: input, shape index: {}]   ;;  %s1455_s6 = inlined_call_operand.vmem [shape: f32[1,128], index: 6, kind: input, shape index: {}]   ;;  %s1456_s7 = inlined_call_operand.hbm [shape: f32[128,256], index: 7, kind: input, shape index: {}]   ;;  %s1457_s8 = inlined_call_operand.hbm [shape: bf16[16,128], index: 8, kind: output, shape index: {0}]   ;;  %s1458_s9 = inlined_call_operand.hbm [shape: f32[16,128], index: 9, kind: output, shape index: {1}]   ;;  %s1459_s10 = inlined_call_operand.hbm [shape: f32[16,256], index: 10, kind: output, shape index: {2}]  }
   0x1   :  { %17 = vsyncpa [#allocation7], 0 }
   0x2   :  { %18 = vsyncpa [#allocation10], 0 }
   0x3   :  { %19 = vsyncpa [#allocation5], 0 }
   0x4   :  { %20 = vsyncpa [#allocation14], 0  ;;  %s1202_s13 = smov [#allocation6]   ;;  %s1203_s15 = smov [#allocation9]  }
   0x5   :  { %s38_s14 = sshll.u32 %s1202_s13, 4  ;;  %s66_s16 = sshll.u32 %s1203_s15, 4  ;;  %s39_s14 = int_to_ptr.vmem [resolvable:$true] %s38_s14  ;;  %s1272_s16 = int_to_ptr.vmem [resolvable:$true] %s66_s16 }
   0x6   :  { %s1016_s19 = scalar_lea.hbm %s1450_s1, 2048 }
   0x7   :  { %p1017_p0 = scmp.ne.s32.totalorder %s1450_s1, %s1016_s19  ;;  %p1020_p1 = scmp.lt.u32.totalorder %s1016_s19, %s1450_s1 }
   0x9   :  { %p1022_p2 = pnand %p1020_p1, %p1017_p0 }
   0xb   :  { %1025 = shalt.err (!%p1022_p2)
}
   0xc   :  { %s1026_s24 = scalar_lea.vmem %s39_s14, 2048  ;;  %p1031_p4 = scmp.lt.s32.totalorder %s39_s14, %s39_s14 }
   0xd   :  { %p1027_p3 = scmp.ne.s32.totalorder %s39_s14, %s1026_s24  ;;  %p1032_p5 = scmp.lt.s32.totalorder %s1026_s24, %s1026_s24 }
   0xf   :  { %p1033_p6 = por %p1032_p5, %p1031_p4 }
  0x11   :  { %p1034_p7 = pnand %p1033_p6, %p1027_p3 }
  0x13   :  { %1037 = shalt.err (!%p1034_p7)
}
  0x14   :  { %s1204_s25 = smov 128   ;;  %s1205_s26 = smov 8  }
  0x15   :  { %44 = dma.hbm_to_vmem [thread:$0]  %s1450_s1, 2048, %s39_s14, [#allocation7], %s1204_s25, %s1204_s25, %s1205_s26  }
  0x16   :  { %s1038_s11 = scalar_lea.hbm %s1454_s5, 2048 }
  0x17   :  { %p1039_p8 = scmp.ne.s32.totalorder %s1454_s5, %s1038_s11  ;;  %p1042_p9 = scmp.lt.u32.totalorder %s1038_s11, %s1454_s5 }
  0x19   :  { %p1044_p10 = pnand %p1042_p9, %p1039_p8 }
  0x1b   :  { %1047 = shalt.err (!%p1044_p10)
}
  0x1c   :  { %s1048_s18 = scalar_lea.vmem %s1272_s16, 2048  ;;  %p1053_p12 = scmp.lt.s32.totalorder %s1272_s16, %s1272_s16 }
  0x1d   :  { %p1049_p11 = scmp.ne.s32.totalorder %s1272_s16, %s1048_s18  ;;  %p1054_p13 = scmp.lt.s32.totalorder %s1048_s18, %s1048_s18 }
  0x1f   :  { %p1055_p0 = por %p1054_p13, %p1053_p12 }
  0x21   :  { %p1056_p1 = pnand %p1055_p0, %p1049_p11 }
  0x23   :  { %1059 = shalt.err (!%p1056_p1)
}
  0x24   :  { %72 = dma.hbm_to_vmem [thread:$0]  %s1454_s5, 2048, %s1272_s16, [#allocation10], %s1204_s25, %s1204_s25, %s1205_s26  }
  0x25   :  { %s1206_s19 = smov [#allocation3]   ;;  %s1207_s21 = smov [#allocation8]  }
  0x26   :  { %s26_s20 = sshll.u32 %s1206_s19, 4  ;;  %s52_s22 = sshll.u32 %s1207_s21, 4  ;;  %s27_s20 = int_to_ptr.vmem [resolvable:$true] %s26_s20  ;;  %s1309_s22 = int_to_ptr.vmem [resolvable:$true] %s52_s22 }
  0x27   :  { %s1060_s27 = scalar_lea.hbm %s1449_s0, 256 }
  0x28   :  { %p1061_p2 = scmp.ne.s32.totalorder %s1449_s0, %s1060_s27  ;;  %p1064_p3 = scmp.lt.u32.totalorder %s1060_s27, %s1449_s0 }
  0x2a   :  { %p1066_p4 = pnand %p1064_p3, %p1061_p2 }
  0x2c   :  { %1069 = shalt.err (!%p1066_p4)
}
  0x2d   :  { %s1070_s5 = scalar_lea.vmem %s27_s20, 256  ;;  %p1075_p6 = scmp.lt.s32.totalorder %s27_s20, %s27_s20 }
  0x2e   :  { %p1071_p5 = scmp.ne.s32.totalorder %s27_s20, %s1070_s5  ;;  %p1076_p7 = scmp.lt.s32.totalorder %s1070_s5, %s1070_s5 }
  0x30   :  { %p1077_p8 = por %p1076_p7, %p1075_p6 }
  0x32   :  { %p1078_p9 = pnand %p1077_p8, %p1071_p5 }
  0x34   :  { %1081 = shalt.err (!%p1078_p9)
}
  0x35   :  { %32 = dma.hbm_to_vmem [thread:$0]  %s1449_s0, 256, %s27_s20, [#allocation4], %s1204_s25, %s1204_s25, %s1205_s26  }
  0x36   :  { %s1082_s17 = scalar_lea.hbm %s1452_s3, 2048 }
  0x37   :  { %p1083_p10 = scmp.ne.s32.totalorder %s1452_s3, %s1082_s17  ;;  %p1086_p11 = scmp.lt.u32.totalorder %s1082_s17, %s1452_s3 }
  0x39   :  { %p1088_p12 = pnand %p1086_p11, %p1083_p10 }
  0x3b   :  { %1091 = shalt.err (!%p1088_p12)
}
  0x3c   :  { %s1092_s21 = scalar_lea.vmem %s1309_s22, 2048  ;;  %p1097_p0 = scmp.lt.s32.totalorder %s1309_s22, %s1309_s22 }
  0x3d   :  { %p1093_p13 = scmp.ne.s32.totalorder %s1309_s22, %s1092_s21  ;;  %p1098_p1 = scmp.lt.s32.totalorder %s1092_s21, %s1092_s21 }
  0x3f   :  { %p1099_p2 = por %p1098_p1, %p1097_p0 }
  0x41   :  { %p1100_p3 = pnand %p1099_p2, %p1093_p13 }
  0x43   :  { %1103 = shalt.err (!%p1100_p3)
}
  0x44   :  { %58 = dma.hbm_to_vmem [thread:$0]  %s1452_s3, 2048, %s1309_s22, [#allocation7], %s1204_s25, %s1204_s25, %s1205_s26  }
  0x45   :  { %s1208_s23 = smov [#allocation11]   ;;  %s1104_s29 = scalar_lea.hbm %s1456_s7, 4096 }
  0x46   :  { %s80_s24 = sshll.u32 %s1208_s23, 4  ;;  %p1105_p4 = scmp.ne.s32.totalorder %s1456_s7, %s1104_s29  ;;  %s81_s24 = int_to_ptr.vmem [resolvable:$true] %s80_s24 }
  0x47   :  { %p1108_p5 = scmp.lt.u32.totalorder %s1104_s29, %s1456_s7 }
  0x49   :  { %p1110_p6 = pnand %p1108_p5, %p1105_p4 }
  0x4b   :  { %1113 = shalt.err (!%p1110_p6)
}
  0x4c   :  { %s1114_s12 = scalar_lea.vmem %s81_s24, 4096  ;;  %p1119_p8 = scmp.lt.s32.totalorder %s81_s24, %s81_s24 }
  0x4d   :  { %p1115_p7 = scmp.ne.s32.totalorder %s81_s24, %s1114_s12  ;;  %p1120_p9 = scmp.lt.s32.totalorder %s1114_s12, %s1114_s12 }
  0x4f   :  { %p1121_p10 = por %p1120_p9, %p1119_p8 }
  0x51   :  { %p1122_p11 = pnand %p1121_p10, %p1115_p7 }
  0x53   :  { %1125 = shalt.err (!%p1122_p11)
}
  0x54   :  { %s1209_s3 = smov 256   ;;  %s1210_s22 = smov 16  }
  0x55   :  { %86 = dma.hbm_to_vmem [thread:$0]  %s1456_s7, 4096, %s81_s24, [#allocation10], %s1209_s3, %s1209_s3, %s1210_s22  }
  0x56   :  { %1192 = dma.done.wait [#allocation4], 256  }
  0x57   :  { %1193 = vsyncadd [#allocation4], 4294967040 }
  0x58   :  { %1194 = dma.done.wait [#allocation7], 4096  }
  0x59   :  { %1195 = vsyncadd [#allocation7], 4294963200 }
  0x5a   :  { %1196 = dma.done.wait [#allocation10], 6144  }
  0x5b   :  { %1197 = vsyncadd [#allocation10], 4294961152  ;;  %v128_v0 = vld [vmem:[#allocation6] sm:$0xff]  ;;  %v129_v1 = vld [vmem:[#allocation6 + $0x8] sm:$0xff]  ;;  %s1213_s19 = smov [#allocation12]  }
  0x5c   :  { %v130_v2 = vld [vmem:[#allocation6 + $0x10] sm:$0xff]  ;;  %v853_v3 = vpack.c.bf16 %v129_v1, %v128_v0  ;;  %v131_v4 = vld [vmem:[#allocation6 + $0x18] sm:$0xff]  ;;  %v132_v6 = vld [vmem:[#allocation6 + $0x20] sm:$0xff]  ;;  %s633_s21 = sshll.u32 %s1213_s19, 4  ;;  %s634_s21 = int_to_ptr.vmem [resolvable:$true] %s633_s21 }
  0x5d   :  { %v857_v5 = vpack.c.bf16 %v131_v4, %v130_v2  ;;  %v133_v7 = vld [vmem:[#allocation6 + $0x28] sm:$0xff]  ;;  %v108_v9 = vld [vmem:[#allocation3] sm:$0xff]  ;;  %v109_v10 = vld [vmem:[#allocation3 + $0x8] sm:$0xff] }
  0x5e   :  { %854 = vmatprep.subr.bf16.mxu0 %v853_v3  ;;  %v861_v8 = vpack.c.bf16 %v133_v7, %v132_v6  ;;  %v134_v11 = vld [vmem:[#allocation6 + $0x30] sm:$0xff]  ;;  %v135_v12 = vld [vmem:[#allocation6 + $0x38] sm:$0xff]  ;;  %v110_v13 = vmul.f32 0.5, %v108_v9  ;;  %v111_v14 = vmul.f32 0.5, %v109_v10  ;;  %v136_v18 = vld [vmem:[#allocation6 + $0x40] sm:$0xff] }
  0x5f   :  { %856 = vmatpush3.bf16.msra.mxu0 %v853_v3  ;;  %v865_v15 = vpack.c.bf16 %v135_v12, %v134_v11  ;;  %v137_v19 = vld [vmem:[#allocation6 + $0x48] sm:$0xff]  ;;  %v138_v22 = vld [vmem:[#allocation6 + $0x50] sm:$0xff]  ;;  %v139_v23 = vld [vmem:[#allocation6 + $0x58] sm:$0xff] }
  0x60   :  { %858 = vmatprep.subr.bf16.mxu0 %v857_v5  ;;  %vm112_vm0 = vcmp.eq.f32.partialorder %v110_v13, 1.5  ;;  %vm113_vm1 = vcmp.eq.f32.partialorder %v111_v14, 1.5  ;;  %v869_v21 = vpack.c.bf16 %v137_v19, %v136_v18  ;;  %v873_v24 = vpack.c.bf16 %v139_v23, %v138_v22  ;;  %v140_v25 = vld [vmem:[#allocation6 + $0x60] sm:$0xff]  ;;  %v141_v26 = vld [vmem:[#allocation6 + $0x68] sm:$0xff]  ;;  %v142_v28 = vld [vmem:[#allocation6 + $0x70] sm:$0xff] }
  0x61   :  { %v114_v16 = vsel %vm112_vm0, 0.0, %v110_v13  ;;  %v115_v17 = vsel %vm113_vm1, 0.0, %v111_v14  ;;  %vm680_vm2 = vmneg %vm112_vm0  ;;  %v877_v27 = vpack.c.bf16 %v141_v26, %v140_v25  ;;  %v143_v29 = vld [vmem:[#allocation6 + $0x78] sm:$0xff]  ;;  %v251_v31 = vld [vmem:[#allocation8] sm:$0xff] }
  0x62   :  { %v692_v20 = vpack.c.bf16 %v115_v17, %v114_v16  ;;  %780 = vmatprep.mubr.msk.f32.mxu0 %vm680_vm2, %v110_v13  ;;  %v881_v30 = vpack.c.bf16 %v143_v29, %v142_v28  ;;  %vm682_vm3 = vmneg %vm113_vm1  ;;  %v252_v32 = vld [vmem:[#allocation8 + $0x8] sm:$0xff]  ;;  %v253_v33 = vld [vmem:[#allocation8 + $0x10] sm:$0xff] }
  0x63   :  { %860 = vmatpush3.bf16.msra.mxu0 %v857_v5  ;;  %v885_v34 = vpack.c.bf16 %v252_v32, %v251_v31  ;;  %v254_v35 = vld [vmem:[#allocation8 + $0x18] sm:$0xff]  ;;  %v255_v37 = vld [vmem:[#allocation8 + $0x20] sm:$0xff]  ;;  %v256_v38 = vld [vmem:[#allocation8 + $0x28] sm:$0xff] }
  0x64   :  { %862 = vmatprep.subr.bf16.mxu0 %v861_v8  ;;  %693 = vst [vmem:[#allocation12] sm:$0xff] %v692_v20   ;;  %v889_v36 = vpack.c.bf16 %v254_v35, %v253_v33  ;;  %v893_v39 = vpack.c.bf16 %v256_v38, %v255_v37  ;;  %v257_v44 = vld [vmem:[#allocation8 + $0x30] sm:$0xff]  ;;  %v258_v45 = vld [vmem:[#allocation8 + $0x38] sm:$0xff]  ;;  %v259_v47 = vld [vmem:[#allocation8 + $0x40] sm:$0xff] }
  0x65   :  { %886 = vmatprep.subr.bf16.mxu1 %v885_v34  ;;  %v897_v46 = vpack.c.bf16 %v258_v45, %v257_v44  ;;  %v260_v48 = vld [vmem:[#allocation8 + $0x48] sm:$0xff]  ;;  %v261_v50 = vld [vmem:[#allocation8 + $0x50] sm:$0xff]  ;;  %v262_v51 = vld [vmem:[#allocation8 + $0x58] sm:$0xff] }
  0x66   :  { %888 = vmatpush3.bf16.msra.mxu1 %v885_v34  ;;  %v901_v49 = vpack.c.bf16 %v260_v48, %v259_v47  ;;  %v263_v52 = vld [vmem:[#allocation8 + $0x60] sm:$0xff]  ;;  %v905_v53 = vpack.c.bf16 %v262_v51, %v261_v50  ;;  %v264_v54 = vld [vmem:[#allocation8 + $0x68] sm:$0xff]  ;;  %v265_v56 = vld [vmem:[#allocation8 + $0x70] sm:$0xff] }
  0x67   :  { %864 = vmatpush3.bf16.msra.mxu0 %v861_v8  ;;  %890 = vmatprep.subr.bf16.mxu1 %v889_v36  ;;  %v909_v55 = vpack.c.bf16 %v264_v54, %v263_v52  ;;  %v266_v57 = vld [vmem:[#allocation8 + $0x78] sm:$0xff]  ;;  %v351_v59 = vld [vmem:[#allocation9] sm:$0xff]  ;;  %v352_v60 = vld [vmem:[#allocation9 + $0x8] sm:$0xff] }
  0x68   :  { %866 = vmatprep.subr.bf16.mxu0 %v865_v15  ;;  %v913_v58 = vpack.c.bf16 %v266_v57, %v265_v56  ;;  %v353_v61 = vld [vmem:[#allocation9 + $0x10] sm:$0xff]  ;;  %v917_v62 = vpack.c.bf16 %v352_v60, %v351_v59  ;;  %v354_v63 = vld [vmem:[#allocation9 + $0x18] sm:$0xff]  ;;  %v355_v1 = vld [vmem:[#allocation9 + $0x20] sm:$0xff] }
  0x69   :  { %v921_v0 = vpack.c.bf16 %v354_v63, %v353_v61  ;;  %v356_v2 = vld [vmem:[#allocation9 + $0x28] sm:$0xff]  ;;  %v357_v4 = vld [vmem:[#allocation9 + $0x30] sm:$0xff]  ;;  %v358_v5 = vld [vmem:[#allocation9 + $0x38] sm:$0xff] }
  0x6a   :  { %892 = vmatpush3.bf16.msra.mxu1 %v889_v36  ;;  %v925_v3 = vpack.c.bf16 %v356_v2, %v355_v1  ;;  %v929_v6 = vpack.c.bf16 %v358_v5, %v357_v4  ;;  %v359_v7 = vld [vmem:[#allocation9 + $0x40] sm:$0xff]  ;;  %v360_v8 = vld [vmem:[#allocation9 + $0x48] sm:$0xff]  ;;  %v361_v10 = vld [vmem:[#allocation9 + $0x50] sm:$0xff] }
  0x6b   :  { %868 = vmatpush3.bf16.msra.mxu0 %v865_v15  ;;  %894 = vmatprep.subr.bf16.mxu1 %v893_v39  ;;  %v933_v9 = vpack.c.bf16 %v360_v8, %v359_v7  ;;  %v362_v11 = vld [vmem:[#allocation9 + $0x58] sm:$0xff]  ;;  %v363_v13 = vld [vmem:[#allocation9 + $0x60] sm:$0xff]  ;;  %v684_v23 = vld [vmem:[%s1451_s2] ss:$0 sm:$0xff] }
  0x6c   :  { %870 = vmatprep.subr.bf16.mxu0 %v869_v21  ;;  %v937_v12 = vpack.c.bf16 %v362_v11, %v361_v10  ;;  %v365_v29 = vld [vmem:[#allocation9 + $0x70] sm:$0xff]  ;;  %v508_v51 = vld [vmem:[#allocation11 + $0x8] sm:$0xff]  ;;  %v510_v52 = vld [vmem:[#allocation11 + $0x18] sm:$0xff] }
  0x6d   :  { %v685_v32 = vld [vmem:[%s1453_s4] ss:$0 sm:$0xff]  ;;  %v949_v54 = vpack.c.bf16 %v510_v52, %v508_v51  ;;  %v512_v56 = vld [vmem:[#allocation11 + $0x28] sm:$0xff]  ;;  %v514_v57 = vld [vmem:[#allocation11 + $0x38] sm:$0xff]  ;;  %s1212_s4 = smov [#allocation13]  }
  0x6e   :  { %896 = vmatpush3.bf16.msra.mxu1 %v893_v39  ;;  %v449_v39 = vlaneseq  ;;  %v953_v59 = vpack.c.bf16 %v514_v57, %v512_v56  ;;  %v511_v60 = vld [vmem:[#allocation11 + $0x20] sm:$0xff]  ;;  %v513_v61 = vld [vmem:[#allocation11 + $0x30] sm:$0xff]  ;;  %v518_v63 = vld [vmem:[#allocation11 + $0x58] sm:$0xff] }
  0x6f   :  { %872 = vmatpush3.bf16.msra.mxu0 %v869_v21  ;;  %898 = vmatprep.subr.bf16.mxu1 %v897_v46  ;;  %v515_v2 = vld [vmem:[#allocation11 + $0x40] sm:$0xff]  ;;  %v520_v4 = vld [vmem:[#allocation11 + $0x68] sm:$0xff]  ;;  %v522_v5 = vld [vmem:[#allocation11 + $0x78] sm:$0xff] }
  0x70   :  { %874 = vmatprep.subr.bf16.mxu0 %v873_v24  ;;  %v961_v7 = vpack.c.bf16 %v522_v5, %v520_v4  ;;  %v536_v48 = vld [vmem:[#allocation11 + $0xe8] sm:$0xff] }
  0x72   :  { %900 = vmatpush3.bf16.msra.mxu1 %v897_v46 }
  0x73   :  { %876 = vmatpush3.bf16.msra.mxu0 %v873_v24  ;;  %902 = vmatprep.subr.bf16.mxu1 %v901_v49 }
  0x74   :  { %878 = vmatprep.subr.bf16.mxu0 %v877_v27 }
  0x76   :  { %904 = vmatpush3.bf16.msra.mxu1 %v901_v49 }
  0x77   :  { %880 = vmatpush3.bf16.msra.mxu0 %v877_v27  ;;  %906 = vmatprep.subr.bf16.mxu1 %v905_v53 }
  0x78   :  { %882 = vmatprep.subr.bf16.mxu0 %v881_v30 }
  0x7a   :  { %908 = vmatpush3.bf16.msra.mxu1 %v905_v53  ;;  %v507_v53 = vld [vmem:[#allocation11] sm:$0xff] }
  0x7b   :  { %884 = vmatpush3.bf16.msra.mxu0 %v881_v30  ;;  %910 = vmatprep.subr.bf16.mxu1 %v909_v55  ;;  %v366_v30 = vld [vmem:[#allocation9 + $0x78] sm:$0xff] }
  0x7c   :  { %918 = vmatprep.subr.bf16.mxu0 %v917_v62  ;;  %v945_v31 = vpack.c.bf16 %v366_v30, %v365_v29  ;;  %v521_v29 = vld [vmem:[#allocation11 + $0x70] sm:$0xff] }
  0x7e   :  { %781 = vmatmul.mubr.msk.f32.vlgmr.msra.gmra.mrb[0].mxu0 %vm682_vm3, %v111_v14  ;;  %912 = vmatpush3.bf16.msra.mxu1 %v909_v55  ;;  %v364_v14 = vld [vmem:[#allocation9 + $0x68] sm:$0xff]  ;;  %v509_v55 = vld [vmem:[#allocation11 + $0x10] sm:$0xff] }
  0x7f   :  { %914 = vmatprep.subr.bf16.mxu1 %v913_v58  ;;  %920 = vmatpush3.bf16.msra.mxu0 %v917_v62  ;;  %v941_v15 = vpack.c.bf16 %v364_v14, %v363_v13  ;;  %v516_v62 = vld [vmem:[#allocation11 + $0x48] sm:$0xff] }
  0x80   :  { %922 = vmatprep.subr.bf16.mxu0 %v921_v0  ;;  %v957_v1 = vpack.c.bf16 %v518_v63, %v516_v62 }
  0x82   :  { %916 = vmatpush3.bf16.msra.mxu1 %v913_v58  ;;  %v951_v58 = vpack.c.bf16 %v509_v55, %v507_v53  ;;  %v535_v53 = vld [vmem:[#allocation11 + $0xe0] sm:$0xff] }
  0x83   :  { %924 = vmatpush3.bf16.msra.mxu0 %v921_v0  ;;  %950 = vmatprep.subr.bf16.mxu1 %v949_v54  ;;  %v955_v0 = vpack.c.bf16 %v513_v61, %v511_v60  ;;  %v537_v54 = vld [vmem:[#allocation11 + $0xf0] sm:$0xff] }
  0x84   :  { %926 = vmatprep.subr.bf16.mxu0 %v925_v3  ;;  %v979_v55 = vpack.c.bf16 %v537_v54, %v535_v53 }
  0x87   :  { %928 = vmatpush3.bf16.msra.mxu0 %v925_v3  ;;  %v517_v3 = vld [vmem:[#allocation11 + $0x50] sm:$0xff] }
  0x88   :  { %930 = vmatprep.subr.bf16.mxu0 %v929_v6 }
  0x8b   :  { %932 = vmatpush3.bf16.msra.mxu0 %v929_v6  ;;  %v959_v6 = vpack.c.bf16 %v517_v3, %v515_v2 }
  0x8c   :  { %934 = vmatprep.subr.bf16.mxu0 %v933_v9 }
  0x8f   :  { %936 = vmatpush3.bf16.msra.mxu0 %v933_v9 }
  0x90   :  { %938 = vmatprep.subr.bf16.mxu0 %v937_v12 }
  0x93   :  { %940 = vmatpush3.bf16.msra.mxu0 %v937_v12 }
  0x94   :  { %942 = vmatprep.subr.bf16.mxu0 %v941_v15 }
  0x97   :  { %944 = vmatpush3.bf16.msra.mxu0 %v941_v15 }
  0x98   :  { %946 = vmatprep.subr.bf16.mxu0 %v945_v31 }
  0x9b   :  { %948 = vmatpush3.bf16.msra.mxu0 %v945_v31  ;;  %v524_v31 = vld [vmem:[#allocation11 + $0x88] sm:$0xff] }
 0x151   :  { %v1363_v40 = vpop.f32.mrb[0].mxu0 }
 0x152   :  { %v1365_v41 = vpop.f32.mrb[1].mxu0  ;;  %v229_v43 = vmul.f32 %v1363_v40, %v1363_v40 }
 0x153   :  { %v228_v42 = vmul.f32 %v1365_v41, %v1365_v41 }
 0x155   :  { %230 = vadd.xlane.f32.xlu0 %v228_v42 }
 0x159   :  { %232 = vadd.xlane.f32.xlu0 %v229_v43 }
 0x1e2   :  { %v231_v16 = vpop.xlane.xlu0 %230 }
 0x1e3   :  { %v234_v17 = vmul.f32 0.03125, %v231_v16 }
 0x1e5   :  { %v236_v18 = vadd.f32 1e-08, %v234_v17 }
 0x1e6   :  { %v233_v19 = vpop.xlane.xlu0 %232 }
 0x1e7   :  { %996 = vrsqrt.f32 %v236_v18  ;;  %v235_v20 = vmul.f32 0.03125, %v233_v19 }
 0x1e9   :  { %v237_v21 = vadd.f32 1e-08, %v235_v20 }
 0x1eb   :  { %998 = vrsqrt.f32 %v237_v21 }
 0x1f1   :  { %v997_v22 = vpop.eup %996 }
 0x1f2   :  { %v240_v24 = vmul.f32 %v997_v22, %v1365_v41  ;;  %v686_v41 = vld [vmem:[%s1455_s6] ss:$0 sm:$0xff]  ;;  %s645_s6 = sshll.u32 %s1212_s4, 4  ;;  %s646_s6 = int_to_ptr.vmem [resolvable:$true] %s645_s6 }
 0x1f3   :  { %s1126_s0 = scalar_lea.vmem %s646_s6, 256  ;;  %p1131_p13 = scmp.lt.s32.totalorder %s646_s6, %s646_s6 }
 0x1f4   :  { %v249_v25 = vmul.f32 %v684_v23, %v240_v24  ;;  %p1127_p12 = scmp.ne.s32.totalorder %s646_s6, %s1126_s0  ;;  %p1132_p0 = scmp.lt.s32.totalorder %s1126_s0, %s1126_s0 }
 0x1f5   :  { %v999_v26 = vpop.eup %998 }
 0x1f6   :  { %v241_v27 = vmul.f32 %v999_v26, %v1363_v40  ;;  %815 = vmatprep.mubr.f32.mxu1 %v249_v25  ;;  %v1379_v40 = vand.u32 127, %v449_v39  ;;  %p1133_p1 = por %p1132_p0, %p1131_p13 }
 0x1f8   :  { %v250_v28 = vmul.f32 %v684_v23, %v241_v27  ;;  %vm452_vm4 = vcmp.lt.s32.totalorder %v1379_v40, 3  ;;  %vm478_vm5 = vcmp.ge.s32.totalorder %v1379_v40, 3  ;;  %vm479_vm6 = vcmp.lt.s32.totalorder %v1379_v40, 7  ;;  %v527_v40 = vld [vmem:[#allocation11 + $0xa0] sm:$0xff]  ;;  %p1134_p2 = pnand %p1133_p1, %p1127_p12 }
 0x1f9   :  { %vm1391_vm7 = vmand %vm478_vm5, %vm479_vm6 }
 0x1fa   :  { %816 = vmatmul.mubr.f32.vlgmr.msra.gmra.mrb[0].mxu1 %v250_v28  ;;  %v519_v28 = vld [vmem:[#allocation11 + $0x60] sm:$0xff] }
 0x1fb   :  { %952 = vmatpush1.bf16.msra.mxu1 %v951_v58  ;;  %v963_v30 = vpack.c.bf16 %v521_v29, %v519_v28 }
 0x1fc   :  { %954 = vmatprep.subr.bf16.mxu1 %v953_v59 }
 0x1ff   :  { %956 = vmatpush1.bf16.msra.mxu1 %v955_v0 }
 0x200   :  { %958 = vmatprep.subr.bf16.mxu1 %v957_v1 }
 0x203   :  { %960 = vmatpush1.bf16.msra.mxu1 %v959_v6 }
 0x204   :  { %962 = vmatprep.subr.bf16.mxu1 %v961_v7 }
 0x207   :  { %964 = vmatpush1.bf16.msra.mxu1 %v963_v30 }
 0x2cd   :  { %v817_v33 = vpop.f32.mrb[0].mxu1 }
 0x2ce   :  { %v346_v34 = vadd.f32 %v817_v33, %v685_v32  ;;  %v340_v35 = vpop.f32.mrb[1].mxu1 }
 0x2cf   :  { %v341_v36 = vadd.f32 %v685_v32, %v340_v35  ;;  %v526_v32 = vld [vmem:[#allocation11 + $0x98] sm:$0xff]  ;;  %v525_v35 = vld [vmem:[#allocation11 + $0x90] sm:$0xff] }
 0x2d0   :  { %v350_v38 = vmax.f32 %v346_v34, 0.0  ;;  %v965_v33 = vpack.c.bf16 %v526_v32, %v524_v31  ;;  %v523_v34 = vld [vmem:[#allocation11 + $0x80] sm:$0xff] }
 0x2d1   :  { %v349_v37 = vmax.f32 %v341_v36, 0.0  ;;  %v967_v36 = vpack.c.bf16 %v525_v35, %v523_v34 }
 0x2d2   :  { %966 = vmatprep.subr.bf16.mxu1 %v965_v33 }
 0x2d3   :  { %850 = vmatprep.mubr.f32.mxu0 %v349_v37  ;;  %968 = vmatpush1.bf16.msra.mxu1 %v967_v36  ;;  %v528_v37 = vld [vmem:[#allocation11 + $0xa8] sm:$0xff] }
 0x2d4   :  { %851 = vmatmul.mubr.f32.vlgmr.msra.gmra.mrb[2].mxu0 %v350_v38  ;;  %v530_v38 = vld [vmem:[#allocation11 + $0xb8] sm:$0xff] }
 0x2d5   :  { %v969_v39 = vpack.c.bf16 %v530_v38, %v528_v37 }
 0x2d7   :  { %970 = vmatprep.subr.bf16.mxu1 %v969_v39 }
 0x3a7   :  { %v852_v42 = vpop.f32.mrb[2].mxu0 }
 0x3a8   :  { %v446_v43 = vadd.f32 %v852_v42, %v686_v41  ;;  %v440_v44 = vpop.f32.mrb[3].mxu0 }
 0x3a9   :  { %v441_v45 = vadd.f32 %v686_v41, %v440_v44  ;;  %v529_v41 = vld [vmem:[#allocation11 + $0xb0] sm:$0xff]  ;;  %v534_v44 = vld [vmem:[#allocation11 + $0xd8] sm:$0xff] }
 0x3aa   :  { %v455_v46 = vsel %vm452_vm4, %v446_v43, -inf  ;;  %v482_v50 = vsel %vm1391_vm7, %v446_v43, -inf  ;;  %v971_v42 = vpack.c.bf16 %v529_v41, %v527_v40 }
 0x3ab   :  { %458 = vmax.xlane.f32.xlu0 %v455_v46  ;;  %v454_v47 = vsel %vm452_vm4, %v441_v45, -inf  ;;  %v481_v49 = vsel %vm1391_vm7, %v441_v45, -inf }
 0x3ac   :  { %456 = vmax.xlane.f32.xlu1 %v454_v47  ;;  %972 = vmatpush1.bf16.msra.mxu1 %v971_v42  ;;  %v533_v47 = vld [vmem:[#allocation11 + $0xd0] sm:$0xff] }
 0x3b0   :  { %483 = vmax.xlane.f32.xlu1 %v481_v49  ;;  %v538_v49 = vld [vmem:[#allocation11 + $0xf8] sm:$0xff] }
 0x3b1   :  { %v977_v52 = vpack.c.bf16 %v538_v49, %v536_v48 }
 0x3b4   :  { %485 = vmax.xlane.f32.xlu1 %v482_v50  ;;  %v1211_v50 = vmov 0.0  }
 0x3b5   :  { %603 = vmatprep.mubr.f32.mxu1 %v1211_v50 }
 0x438   :  { %v459_v8 = vpop.xlane.xlu0 %458 }
 0x439   :  { %v461_v9 = vsub.f32 %v446_v43, %v459_v8  ;;  %v457_v10 = vpop.xlane.xlu1 %456 }
 0x43a   :  { %v460_v11 = vsub.f32 %v441_v45, %v457_v10 }
 0x43b   :  { %v464_v12 = vmul.f32 1.442695, %v461_v9 }
 0x43c   :  { %v462_v13 = vmul.f32 1.442695, %v460_v11 }
 0x43d   :  { %v484_v14 = vpop.xlane.xlu1 %483 }
 0x43e   :  { %1000 = vpow2.f32 %v462_v13  ;;  %v487_v15 = vsub.f32 %v441_v45, %v484_v14  ;;  %v531_v45 = vld [vmem:[#allocation11 + $0xc0] sm:$0xff] }
 0x43f   :  { %1002 = vpow2.f32 %v464_v12  ;;  %v975_v51 = vpack.c.bf16 %v533_v47, %v531_v45 }
 0x440   :  { %v489_v16 = vmul.f32 1.442695, %v487_v15 }
 0x441   :  { %v486_v17 = vpop.xlane.xlu1 %485 }
 0x442   :  { %1004 = vpow2.f32 %v489_v16  ;;  %v488_v18 = vsub.f32 %v446_v43, %v486_v17  ;;  %v532_v43 = vld [vmem:[#allocation11 + $0xc8] sm:$0xff] }
 0x443   :  { %v973_v46 = vpack.c.bf16 %v534_v44, %v532_v43 }
 0x444   :  { %v491_v19 = vmul.f32 1.442695, %v488_v18 }
 0x445   :  { %974 = vmatprep.subr.bf16.mxu1 %v973_v46 }
 0x446   :  { %1006 = vpow2.f32 %v491_v19  ;;  %976 = vmatpush1.bf16.msra.mxu1 %v975_v51 }
 0x447   :  { %978 = vmatprep.subr.bf16.mxu1 %v977_v52 }
 0x448   :  { %v1001_v20 = vpop.eup %1000 }
 0x449   :  { %v466_v21 = vsel %vm452_vm4, %v1001_v20, 0.0  ;;  %v1003_v22 = vpop.eup %1002 }
 0x44a   :  { %468 = vadd.xlane.f32.xlu0 %v466_v21  ;;  %v467_v24 = vsel %vm452_vm4, %v1003_v22, 0.0  ;;  %980 = vmatpush1.bf16.msra.mxu1 %v979_v55 }
 0x44c   :  { %v1005_v23 = vpop.eup %1004 }
 0x44d   :  { %v493_v25 = vsel %vm1391_vm7, %v1005_v23, 0.0 }
 0x44e   :  { %470 = vadd.xlane.f32.xlu0 %v467_v24  ;;  %495 = vadd.xlane.f32.xlu1 %v493_v25 }
 0x450   :  { %v1007_v26 = vpop.eup %1006 }
 0x451   :  { %v494_v27 = vsel %vm1391_vm7, %v1007_v26, 0.0 }
 0x452   :  { %497 = vadd.xlane.f32.xlu1 %v494_v27 }
 0x4d7   :  { %v469_v56 = vpop.xlane.xlu0 %468 }
 0x4d8   :  { %1008 = vrcp.f32 %v469_v56 }
 0x4db   :  { %v471_v57 = vpop.xlane.xlu0 %470  ;;  %v496_v58 = vpop.xlane.xlu1 %495 }
 0x4dc   :  { %1010 = vrcp.f32 %v496_v58 }
 0x4dd   :  { %1012 = vrcp.f32 %v471_v57 }
 0x4df   :  { %v498_v59 = vpop.xlane.xlu1 %497 }
 0x4e0   :  { %1014 = vrcp.f32 %v498_v59 }
 0x4e2   :  { %v1009_v60 = vpop.eup %1008 }
 0x4e3   :  { %v473_v63 = vmul.f32 %v1009_v60, %v466_v21 }
 0x4e6   :  { %v1011_v61 = vpop.eup %1010 }
 0x4e7   :  { %v1013_v62 = vpop.eup %1012  ;;  %v500_v0 = vmul.f32 %v1011_v61, %v493_v25 }
 0x4e8   :  { %v475_v3 = vmul.f32 %v1013_v62, %v467_v24 }
 0x4e9   :  { %v503_v2 = vadd.f32 %v500_v0, %v473_v63 }
 0x4ea   :  { %v1015_v1 = vpop.eup %1014 }
 0x4eb   :  { %v502_v4 = vmul.f32 %v1015_v1, %v494_v27  ;;  %604 = vmatmul.mubr.f32.vlgmr.msra.gmra.mrb[2].mxu1 %v503_v2  ;;  %505 = vst [vmem:[#allocation13] sm:$0xff] %v503_v2 }
 0x4ec   :  { %609 = vmatprep.mubr.f32.mxu1 %v1211_v50 }
 0x4ed   :  { %v504_v5 = vadd.f32 %v502_v4, %v475_v3 }
 0x4ef   :  { %506 = vst [vmem:[#allocation13 + $0x8] sm:$0xff] %v504_v5  ;;  %610 = vmatmul.mubr.f32.gmra.mrb[4].mxu1 %v504_v5 }
 0x4f0   :  { %1137 = shalt.err (!%p1134_p2)
}
 0x4f1   :  { %s1138_s24 = scalar_lea.hbm %s1458_s9, 256 }
 0x4f2   :  { %p1139_p3 = scmp.ne.s32.totalorder %s1458_s9, %s1138_s24  ;;  %p1142_p4 = scmp.lt.u32.totalorder %s1138_s24, %s1458_s9 }
 0x4f4   :  { %p1144_p5 = pnand %p1142_p4, %p1139_p3 }
 0x4f6   :  { %1147 = shalt.err (!%p1144_p5)
}
 0x4f7   :  { %651 = dma.vmem_to_hbm [thread:$0]  %s646_s6, 256, %s1458_s9, [#allocation14], %s1204_s25, %s1204_s25, %s1205_s26  }
 0x4f8   :  { %s1148_s16 = scalar_lea.vmem %s634_s21, 128  ;;  %p1153_p7 = scmp.lt.s32.totalorder %s634_s21, %s634_s21 }
 0x4f9   :  { %p1149_p6 = scmp.ne.s32.totalorder %s634_s21, %s1148_s16  ;;  %p1154_p8 = scmp.lt.s32.totalorder %s1148_s16, %s1148_s16 }
 0x4fb   :  { %p1155_p9 = por %p1154_p8, %p1153_p7 }
 0x4fd   :  { %p1156_p10 = pnand %p1155_p9, %p1149_p6 }
 0x4ff   :  { %1159 = shalt.err (!%p1156_p10)
}
 0x500   :  { %s1160_s15 = scalar_lea.hbm %s1457_s8, 128 }
 0x501   :  { %p1161_p11 = scmp.ne.s32.totalorder %s1457_s8, %s1160_s15  ;;  %p1164_p12 = scmp.lt.u32.totalorder %s1160_s15, %s1457_s8 }
 0x503   :  { %p1166_p13 = pnand %p1164_p12, %p1161_p11 }
 0x505   :  { %1169 = shalt.err (!%p1166_p13)
}
 0x506   :  { %s1214_s9 = smov 64   ;;  %s1215_s25 = smov 4  }
 0x507   :  { %639 = dma.vmem_to_hbm [thread:$0]  %s634_s21, 128, %s1457_s8, [#allocation5], %s1214_s9, %s1214_s9, %s1215_s25  }
 0x508   :  { %s1216_s14 = smov [#allocation15]  }
 0x509   :  { %s657_s4 = sshll.u32 %s1216_s14, 4  ;;  %s658_s4 = int_to_ptr.vmem [resolvable:$true] %s657_s4 }
 0x50a   :  { %s1170_s8 = scalar_lea.vmem %s658_s4, 512  ;;  %p1175_p1 = scmp.lt.s32.totalorder %s658_s4, %s658_s4 }
 0x50b   :  { %p1171_p0 = scmp.ne.s32.totalorder %s658_s4, %s1170_s8  ;;  %p1176_p2 = scmp.lt.s32.totalorder %s1170_s8, %s1170_s8 }
 0x50d   :  { %p1177_p3 = por %p1176_p2, %p1175_p1 }
 0x50f   :  { %p1178_p4 = pnand %p1177_p3, %p1171_p0 }
 0x5be   :  { %v605_v6 = vpop.f32.mrb[2].mxu1 }
 0x5bf   :  { %v616_v7 = vmax.f32 %v605_v6, 0.0  ;;  %v607_v8 = vpop.f32.mrb[3].mxu1 }
 0x5c0   :  { %v617_v9 = vmax.f32 %v607_v8, 0.0 }
 0x5c1   :  { %v620_v10 = vmin.f32 %v616_v7, 1.0 }
 0x5c2   :  { %v621_v11 = vmin.f32 %v617_v9, 1.0  ;;  %v611_v12 = vpop.f32.mrb[4].mxu1 }
 0x5c3   :  { %624 = vst [vmem:[#allocation15] sm:$0xff] %v620_v10  ;;  %v618_v13 = vmax.f32 %v611_v12, 0.0  ;;  %v613_v14 = vpop.f32.mrb[5].mxu1 }
 0x5c4   :  { %625 = vst [vmem:[#allocation15 + $0x8] sm:$0xff] %v621_v11  ;;  %v619_v15 = vmax.f32 %v613_v14, 0.0 }
 0x5c5   :  { %v622_v16 = vmin.f32 %v618_v13, 1.0 }
 0x5c6   :  { %v623_v17 = vmin.f32 %v619_v15, 1.0 }
 0x5c7   :  { %626 = vst [vmem:[#allocation15 + $0x10] sm:$0xff] %v622_v16 }
 0x5c8   :  { %627 = vst [vmem:[#allocation15 + $0x18] sm:$0xff] %v623_v17 }
 0x5c9   :  { %1181 = shalt.err (!%p1178_p4)
}
 0x5ca   :  { %s1182_s21 = scalar_lea.hbm %s1459_s10, 512 }
 0x5cb   :  { %p1183_p5 = scmp.ne.s32.totalorder %s1459_s10, %s1182_s21  ;;  %p1186_p6 = scmp.lt.u32.totalorder %s1182_s21, %s1459_s10 }
 0x5cd   :  { %p1188_p7 = pnand %p1186_p6, %p1183_p5 }
 0x5cf   :  { %1191 = shalt.err (!%p1188_p7)
}
 0x5d0   :  { %663 = dma.vmem_to_hbm [thread:$0]  %s658_s4, 512, %s1459_s10, [#allocation14], %s1209_s3, %s1209_s3, %s1210_s22  }
 0x5d1   :  { %1198 = dma.done.wait [#allocation5], 128  }
 0x5d2   :  { %1199 = vsyncadd [#allocation5], 4294967168 }
 0x5d3   :  { %1200 = dma.done.wait [#allocation14], 768  }
 0x5d4   :  { %1201 = vsyncadd [#allocation14], 4294966528 }
 0x5d5   :  { %673 = vsyncpa [#allocation4], 1 }
 0x5d6   :  { %674 = vsyncpa [#allocation7], 1 }
 0x5d7   :  { %675 = vsyncpa [#allocation10], 1 }
 0x5d8   :  { %676 = vsyncpa [#allocation5], 1 }
 0x5d9   :  { %677 = vsyncpa [#allocation14], 1 }

</bundles_post_ra>
